<compile_context>
chip_gen: v5e
topology: v5e:2x2
jax: 0.10.0
libtpu: 0.0.40
codegen_flags: <defaults>
</compile_context>

<pallas_src>
import numpy as np
import jax
import jax.numpy as jnp
from jax.experimental import pallas as pl
from jax.experimental.pallas import tpu as pltpu

_NEG_SENTINEL = -1e30          # sorts to the end of a descending sort; never summed.
_LANES = 128                   # lane tile (last dim of the reshaped pixel view)
_ROW_ALIGN = 16                # sublane alignment (covers bf16 packed tiles too)
_VMEM_BUDGET = 12 * 1024 * 1024   # double-buffered working-set budget for TR clamp
_VMEM_LIMIT = 32 * 1024 * 1024    # explicit scoped-VMEM limit (safe on v5e/v6e/v7x)


def _round_up(x, m):
    return ((x + m - 1) // m) * m


def _wtd_loss_kernel(rg_ref, ag_ref, sr_ref, sa_ref, cf_ref, neg_ref, stats_ref):
    """One (1, TR, 128) pixel tile of one image.

    neg_ref   : (2, 1, TR, 128) stacked [region, affinity] negative-masked loss
                (sentinel at positive pixels), lane-dense store once per tile.
    stats_ref : (1, 1, 4, 128) per-tile lane-partial stats
                [pos_cnt_r, pos_sum_r, pos_cnt_a, pos_sum_a].
    """
    rg = rg_ref[0].astype(jnp.float32)      # (TR, 128)
    ag = ag_ref[0].astype(jnp.float32)
    sr = sr_ref[0].astype(jnp.float32)
    sa = sa_ref[0].astype(jnp.float32)
    cf = cf_ref[0].astype(jnp.float32)

    # MSELoss(reduce=False) * confidence (elementwise; stays in vregs).
    dr = sr - rg
    da = sa - ag
    lr = dr * dr * cf
    la = da * da * cf

    # Positive-pixel masks on the labels (GT >= 0.1), evaluated after upcast.
    pos_r = rg >= 0.1
    pos_a = ag >= 0.1

    # Negative-masked loss maps (sentinel where positive) for the top-k step.
    neg_ref[0, 0] = jnp.where(pos_r, _NEG_SENTINEL, lr).astype(neg_ref.dtype)
    neg_ref[1, 0] = jnp.where(pos_a, _NEG_SENTINEL, la).astype(neg_ref.dtype)

    # Lane-partial per-tile stats: sublane reduce only, one (4, 128) store; the
    # cross-tile / cross-lane reduction (4 numbers per image) is done in JAX.
    stats_ref[0, 0] = jnp.concatenate(
        [jnp.sum(pos_r.astype(jnp.float32), axis=0, keepdims=True),
         jnp.sum(jnp.where(pos_r, lr, 0.0), axis=0, keepdims=True),
         jnp.sum(pos_a.astype(jnp.float32), axis=0, keepdims=True),
         jnp.sum(jnp.where(pos_a, la, 0.0), axis=0, keepdims=True)],
        axis=0)


def _single_image_loss(neg_masked, pos_cnt_f, pos_sum, n_pixels):
    """Replicates WTD_LOSS.single_image_loss from the kernel outputs.

    neg_masked : (R, Np) loss map with sentinel at positive pixels (Np >= N,
                 padded entries are 0 and loss-neutral).
    pos_cnt_f / pos_sum : (R,) positive-pixel count / sum of loss at positives.
    n_pixels   : real (unpadded) pixel count N.
    Returns (R,) per-row loss.
    """
    # TODO(synk): replace the XLA full sort + prefix-sum with an in-kernel
    # histogram / radix-select two-pass (exact k-th-value threshold + tie
    # correction); for production map sizes this epilogue dominates runtime.
    sorted_desc = -jnp.sort(-neg_masked, axis=-1)
    prefix = jnp.cumsum(sorted_desc.astype(jnp.float32), axis=-1)

    pos_cnt = pos_cnt_f.astype(jnp.int32)
    neg_cnt = n_pixels - pos_cnt              # real negatives only (padding excluded)
    has_pos = pos_cnt > 0
    has_neg = neg_cnt > 0

    # if positives exist: k = min(#neg, 3*#pos)  (covers both torch branches:
    #   mean over all negatives == mean of top-#neg negatives)
    # else:                k = 500 (top-500 over the whole image; with no
    #   positives the neg-masked map equals the full loss map)
    k = jnp.where(has_pos, jnp.minimum(neg_cnt, 3 * pos_cnt), 500)
    k = jnp.clip(k, 1, n_pixels)
    topk_sum = jnp.take_along_axis(prefix, (k - 1)[:, None], axis=-1)[:, 0]
    nega_loss = topk_sum / k.astype(jnp.float32)
    # Guard all-positive images (empty negative set): PyTorch would NaN on the
    # mean of an empty tensor; we drop the negative term instead.
    nega_loss = jnp.where(has_pos & ~has_neg, 0.0, nega_loss)

    posi_loss = jnp.where(has_pos, pos_sum / jnp.maximum(pos_cnt_f, 1.0), 0.0)
    return posi_loss + nega_loss


def wtd_loss(region_score_GT, affinity_score_GT, score_region, score_affinity,
             confidence, *, tr=1024, neg_dtype=jnp.bfloat16):
    inputs = (region_score_GT, affinity_score_GT, score_region, score_affinity,
              confidence)
    B = region_score_GT.shape[0]
    N = int(np.prod(region_score_GT.shape[1:]))
    C = _LANES

    rows = -(-N // C)                                       # 128-lane rows per image
    tr = max(_ROW_ALIGN,
             _round_up(min(int(tr), _round_up(rows, _ROW_ALIGN)), _ROW_ALIGN))

    # Clamp TR so the double-buffered working set stays inside the VMEM budget.
    in_row_bytes = C * sum(np.dtype(x.dtype).itemsize for x in inputs)
    out_row_bytes = 2 * C * np.dtype(neg_dtype).itemsize
    max_tr = max(_ROW_ALIGN,
                 (_VMEM_BUDGET // (2 * (in_row_bytes + out_row_bytes)))
                 // _ROW_ALIGN * _ROW_ALIGN)
    tr = min(tr, max_tr)

    rows_p = _round_up(rows, tr)
    Np = rows_p * C
    T = rows_p // tr

    def prep(x):
        x = x.reshape(B, N)                     # native dtype pass-through
        if Np != N:
            x = jnp.pad(x, ((0, 0), (0, Np - N)))   # zero pad: loss-neutral
        return x.reshape(B, rows_p, C)

    rg, ag, sr, sa, cf = (prep(x) for x in inputs)

    map_spec = pl.BlockSpec((1, tr, C), lambda b, t: (b, t, 0))
    neg_spec = pl.BlockSpec((2, 1, tr, C), lambda b, t: (0, b, t, 0))
    stats_spec = pl.BlockSpec((1, 1, 4, C), lambda b, t: (b, t, 0, 0))

    in_bytes = sum(B * rows_p * C * np.dtype(x.dtype).itemsize for x in inputs)
    out_bytes = (2 * B * rows_p * C * np.dtype(neg_dtype).itemsize
                 + B * T * 4 * C * 4)
    cost = pl.CostEstimate(flops=16 * B * rows_p * C, transcendentals=0,
                           bytes_accessed=in_bytes + out_bytes)

    neg, stats = pl.pallas_call(
        _wtd_loss_kernel,
        grid=(B, T),
        in_specs=[map_spec] * 5,
        out_specs=(neg_spec, stats_spec),
        out_shape=(
            jax.ShapeDtypeStruct((2, B, rows_p, C), neg_dtype),   # stacked neg-masked loss
            jax.ShapeDtypeStruct((B, T, 4, C), jnp.float32),      # per-tile lane-partial stats
        ),
        compiler_params=pltpu.CompilerParams(
            dimension_semantics=("parallel", "parallel"),
            vmem_limit_bytes=_VMEM_LIMIT),
        cost_estimate=cost,
    )(rg, ag, sr, sa, cf)

    # Tiny per-image reductions (4 numbers per image) in JAX.
    totals = jnp.sum(stats, axis=(1, 3))                   # (B, 4)
    pos_cnt = jnp.concatenate([totals[:, 0], totals[:, 2]])  # (2B,) region then affinity
    pos_sum = jnp.concatenate([totals[:, 1], totals[:, 3]])

    # One batched sort/cumsum over the stacked (2B, Np) neg-masked maps.
    per_image = _single_image_loss(neg.reshape(2 * B, Np), pos_cnt, pos_sum, N)
    # char_loss/B + affi_loss/B == sum over all 2B per-image terms / B
    return jnp.sum(per_image) / B


# ---------------- pure-numpy reference (mirrors the PyTorch module) ----------
def _ref_single_image_loss(pre_loss, loss_label):
    B = pre_loss.shape[0]
    pre = pre_loss.reshape(B, -1).astype(np.float64)
    lab = loss_label.reshape(B, -1).astype(np.float64)
    s = 0.0
    for i in range(B):
        pos_mask = lab[i] >= 0.1
        pos = pre[i][pos_mask]
        neg = pre[i][~pos_mask]
        if pos.size != 0:
            s += pos.mean()
            if neg.size < 3 * pos.size:
                s += neg.mean()
            else:
                s += np.sort(neg)[::-1][:3 * pos.size].mean()
        else:
            s += np.sort(pre[i])[::-1][:500].mean()
    return s


def _ref_forward(rg, ag, sr, sa, conf):
    loss_region = (sr - rg) ** 2 * conf
    loss_affinity = (sa - ag) ** 2 * conf
    B = rg.shape[0]
    char = _ref_single_image_loss(loss_region, rg)
    affi = _ref_single_image_loss(loss_affinity, ag)
    return char / B + affi / B


if __name__ == "__main__":
    key = jax.random.PRNGKey(0)
    B, H, W = 2, 24, 32  # H*W = 768 >= 500 so the top-500 fallback is well-defined
    k1, k2, k3, k4, k5, k6, k7 = jax.random.split(key, 7)

    # Sparse-ish GT maps (~20% non-zero) so the dynamic top-k branch is exercised.
    region_score_GT = (jax.random.uniform(k1, (B, H, W)) *
                       (jax.random.uniform(k2, (B, H, W)) < 0.2)).astype(jnp.float32)
    affinity_score_GT = (jax.random.uniform(k3, (B, H, W)) *
                         (jax.random.uniform(k4, (B, H, W)) < 0.2)).astype(jnp.float32)
    score_region = jax.random.uniform(k5, (B, H, W), dtype=jnp.float32)
    score_affinity = jax.random.uniform(k6, (B, H, W), dtype=jnp.float32)
    confidence = jax.random.uniform(k7, (B, H, W), dtype=jnp.float32)

    loss_fn = jax.jit(wtd_loss)
    out = loss_fn(region_score_GT, affinity_score_GT, score_region,
                  score_affinity, confidence)
    out = jax.block_until_ready(out)

    ref = _ref_forward(np.asarray(region_score_GT), np.asarray(affinity_score_GT),
                       np.asarray(score_region), np.asarray(score_affinity),
                       np.asarray(confidence))
    np.testing.assert_allclose(float(out), float(ref), rtol=1e-3, atol=1e-4)
    print("KERNEL_OK")
</pallas_src>

<mosaic_0001>
module attributes {stable_mosaic.version = 11 : i64} {
  func.func @_wtd_loss_kernel(%arg0: i32, %arg1: i32, %arg2: memref<1x16x128xf32, #tpu.memory_space<vmem>>, %arg3: memref<1x16x128xf32, #tpu.memory_space<vmem>>, %arg4: memref<1x16x128xf32, #tpu.memory_space<vmem>>, %arg5: memref<1x16x128xf32, #tpu.memory_space<vmem>>, %arg6: memref<1x16x128xf32, #tpu.memory_space<vmem>>, %arg7: memref<2x1x16x128xbf16, #tpu.memory_space<vmem>>, %arg8: memref<1x1x4x128xf32, #tpu.memory_space<vmem>>) attributes {dimension_semantics = [#tpu.dimension_semantics<parallel>, #tpu.dimension_semantics<parallel>], iteration_bounds = array<i64: 2, 1>, scalar_prefetch = 0 : i64, scratch_operands = 0 : i64, tpu.core_type = #tpu.core_type<tc>, window_params = [{transform_indices = @transform_0, window_bounds = array<i64: 1, 16, 128>}, {transform_indices = @transform_1, window_bounds = array<i64: 1, 16, 128>}, {transform_indices = @transform_2, window_bounds = array<i64: 1, 16, 128>}, {transform_indices = @transform_3, window_bounds = array<i64: 1, 16, 128>}, {transform_indices = @transform_4, window_bounds = array<i64: 1, 16, 128>}, {transform_indices = @transform_5, window_bounds = array<i64: 2, 1, 16, 128>}, {transform_indices = @transform_6, window_bounds = array<i64: 1, 1, 4, 128>}]} {
    %c0 = arith.constant 0 : index
    %c0_0 = arith.constant 0 : index
    %c0_1 = arith.constant 0 : index
    %0 = vector.load %arg2[%c0, %c0_0, %c0_1] : memref<1x16x128xf32, #tpu.memory_space<vmem>>, vector<1x16x128xf32>
    %1 = vector.shape_cast %0 : vector<1x16x128xf32> to vector<16x128xf32>
    %c0_2 = arith.constant 0 : index
    %c0_3 = arith.constant 0 : index
    %c0_4 = arith.constant 0 : index
    %2 = vector.load %arg3[%c0_2, %c0_3, %c0_4] : memref<1x16x128xf32, #tpu.memory_space<vmem>>, vector<1x16x128xf32>
    %3 = vector.shape_cast %2 : vector<1x16x128xf32> to vector<16x128xf32>
    %c0_5 = arith.constant 0 : index
    %c0_6 = arith.constant 0 : index
    %c0_7 = arith.constant 0 : index
    %4 = vector.load %arg4[%c0_5, %c0_6, %c0_7] : memref<1x16x128xf32, #tpu.memory_space<vmem>>, vector<1x16x128xf32>
    %5 = vector.shape_cast %4 : vector<1x16x128xf32> to vector<16x128xf32>
    %c0_8 = arith.constant 0 : index
    %c0_9 = arith.constant 0 : index
    %c0_10 = arith.constant 0 : index
    %6 = vector.load %arg5[%c0_8, %c0_9, %c0_10] : memref<1x16x128xf32, #tpu.memory_space<vmem>>, vector<1x16x128xf32>
    %7 = vector.shape_cast %6 : vector<1x16x128xf32> to vector<16x128xf32>
    %c0_11 = arith.constant 0 : index
    %c0_12 = arith.constant 0 : index
    %c0_13 = arith.constant 0 : index
    %8 = vector.load %arg6[%c0_11, %c0_12, %c0_13] : memref<1x16x128xf32, #tpu.memory_space<vmem>>, vector<1x16x128xf32>
    %9 = vector.shape_cast %8 : vector<1x16x128xf32> to vector<16x128xf32>
    %10 = arith.subf %5, %1 : vector<16x128xf32>
    %11 = arith.subf %7, %3 : vector<16x128xf32>
    %12 = arith.mulf %10, %10 : vector<16x128xf32>
    %13 = arith.mulf %12, %9 : vector<16x128xf32>
    %14 = arith.mulf %11, %11 : vector<16x128xf32>
    %15 = arith.mulf %14, %9 : vector<16x128xf32>
    %cst = arith.constant 1.000000e-01 : f32
    %16 = vector.broadcast %cst : f32 to vector<16x128xf32>
    %17 = arith.cmpf oge, %1, %16 : vector<16x128xf32>
    %cst_14 = arith.constant 1.000000e-01 : f32
    %18 = vector.broadcast %cst_14 : f32 to vector<16x128xf32>
    %19 = arith.cmpf oge, %3, %18 : vector<16x128xf32>
    %cst_15 = arith.constant -1.000000e+30 : f32
    %20 = vector.broadcast %cst_15 : f32 to vector<16x128xf32>
    %21 = arith.select %17, %20, %13 : vector<16x128xi1>, vector<16x128xf32>
    %22 = arith.truncf %21 : vector<16x128xf32> to vector<16x128xbf16>
    %c0_16 = arith.constant 0 : index
    %c0_17 = arith.constant 0 : index
    %c0_18 = arith.constant 0 : index
    %c0_19 = arith.constant 0 : index
    %23 = vector.load %arg7[%c0_16, %c0_17, %c0_18, %c0_19] : memref<2x1x16x128xbf16, #tpu.memory_space<vmem>>, vector<1x1x16x128xbf16>
    %24 = vector.shape_cast %23 : vector<1x1x16x128xbf16> to vector<16x128xbf16>
    %25 = vector.shape_cast %22 : vector<16x128xbf16> to vector<1x1x16x128xbf16>
    tpu.vector_store %arg7[%c0_16, %c0_17, %c0_18, %c0_19], %25 {strides = array<i32>} : memref<2x1x16x128xbf16, #tpu.memory_space<vmem>>, vector<1x1x16x128xbf16>,
    %cst_20 = arith.constant -1.000000e+30 : f32
    %26 = vector.broadcast %cst_20 : f32 to vector<16x128xf32>
    %27 = arith.select %19, %26, %15 : vector<16x128xi1>, vector<16x128xf32>
    %28 = arith.truncf %27 : vector<16x128xf32> to vector<16x128xbf16>
    %c1 = arith.constant 1 : index
    %c0_21 = arith.constant 0 : index
    %c0_22 = arith.constant 0 : index
    %c0_23 = arith.constant 0 : index
    %29 = vector.load %arg7[%c1, %c0_21, %c0_22, %c0_23] : memref<2x1x16x128xbf16, #tpu.memory_space<vmem>>, vector<1x1x16x128xbf16>
    %30 = vector.shape_cast %29 : vector<1x1x16x128xbf16> to vector<16x128xbf16>
    %31 = vector.shape_cast %28 : vector<16x128xbf16> to vector<1x1x16x128xbf16>
    tpu.vector_store %arg7[%c1, %c0_21, %c0_22, %c0_23], %31 {strides = array<i32>} : memref<2x1x16x128xbf16, #tpu.memory_space<vmem>>, vector<1x1x16x128xbf16>,
    %32 = arith.extui %17 : vector<16x128xi1> to vector<16x128xi32>
    %33 = arith.sitofp %32 : vector<16x128xi32> to vector<16x128xf32>
    %cst_24 = arith.constant dense<0.000000e+00> : vector<128xf32>
    %34 = vector.multi_reduction <add>, %33, %cst_24 [0] : vector<16x128xf32> to vector<128xf32>
    %35 = vector.shape_cast %34 : vector<128xf32> to vector<1x128xf32>
    %cst_25 = arith.constant 0.000000e+00 : f32
    %36 = vector.broadcast %cst_25 : f32 to vector<16x128xf32>
    %37 = arith.select %17, %13, %36 : vector<16x128xi1>, vector<16x128xf32>
    %cst_26 = arith.constant dense<0.000000e+00> : vector<128xf32>
    %38 = vector.multi_reduction <add>, %37, %cst_26 [0] : vector<16x128xf32> to vector<128xf32>
    %39 = vector.shape_cast %38 : vector<128xf32> to vector<1x128xf32>
    %40 = arith.extui %19 : vector<16x128xi1> to vector<16x128xi32>
    %41 = arith.sitofp %40 : vector<16x128xi32> to vector<16x128xf32>
    %cst_27 = arith.constant dense<0.000000e+00> : vector<128xf32>
    %42 = vector.multi_reduction <add>, %41, %cst_27 [0] : vector<16x128xf32> to vector<128xf32>
    %43 = vector.shape_cast %42 : vector<128xf32> to vector<1x128xf32>
    %cst_28 = arith.constant 0.000000e+00 : f32
    %44 = vector.broadcast %cst_28 : f32 to vector<16x128xf32>
    %45 = arith.select %19, %15, %44 : vector<16x128xi1>, vector<16x128xf32>
    %cst_29 = arith.constant dense<0.000000e+00> : vector<128xf32>
    %46 = vector.multi_reduction <add>, %45, %cst_29 [0] : vector<16x128xf32> to vector<128xf32>
    %47 = vector.shape_cast %46 : vector<128xf32> to vector<1x128xf32>
    %48 = tpu.concatenate %35, %39, %43, %47 in 0 : vector<1x128xf32>, vector<1x128xf32>, vector<1x128xf32>, vector<1x128xf32> -> vector<4x128xf32>
    %c0_30 = arith.constant 0 : index
    %c0_31 = arith.constant 0 : index
    %c0_32 = arith.constant 0 : index
    %c0_33 = arith.constant 0 : index
    %49 = vector.load %arg8[%c0_30, %c0_31, %c0_32, %c0_33] : memref<1x1x4x128xf32, #tpu.memory_space<vmem>>, vector<1x1x4x128xf32>
    %50 = vector.shape_cast %49 : vector<1x1x4x128xf32> to vector<4x128xf32>
    %51 = vector.shape_cast %48 : vector<4x128xf32> to vector<1x1x4x128xf32>
    tpu.vector_store %arg8[%c0_30, %c0_31, %c0_32, %c0_33], %51 {strides = array<i32>} : memref<1x1x4x128xf32, #tpu.memory_space<vmem>>, vector<1x1x4x128xf32>,
    return
  }
  func.func @transform_0(%arg0: i32, %arg1: i32) -> (i32, i32, i32) {
    %c0_i32 = arith.constant 0 : i32
    %c0_i32_0 = arith.constant 0 : i32
    return %arg0, %arg1, %c0_i32 : i32, i32, i32
  }
  func.func @transform_1(%arg0: i32, %arg1: i32) -> (i32, i32, i32) {
    %c0_i32 = arith.constant 0 : i32
    %c0_i32_0 = arith.constant 0 : i32
    return %arg0, %arg1, %c0_i32 : i32, i32, i32
  }
  func.func @transform_2(%arg0: i32, %arg1: i32) -> (i32, i32, i32) {
    %c0_i32 = arith.constant 0 : i32
    %c0_i32_0 = arith.constant 0 : i32
    return %arg0, %arg1, %c0_i32 : i32, i32, i32
  }
  func.func @transform_3(%arg0: i32, %arg1: i32) -> (i32, i32, i32) {
    %c0_i32 = arith.constant 0 : i32
    %c0_i32_0 = arith.constant 0 : i32
    return %arg0, %arg1, %c0_i32 : i32, i32, i32
  }
  func.func @transform_4(%arg0: i32, %arg1: i32) -> (i32, i32, i32) {
    %c0_i32 = arith.constant 0 : i32
    %c0_i32_0 = arith.constant 0 : i32
    return %arg0, %arg1, %c0_i32 : i32, i32, i32
  }
  func.func @transform_5(%arg0: i32, %arg1: i32) -> (i32, i32, i32, i32) {
    %c0_i32 = arith.constant 0 : i32
    %c0_i32_0 = arith.constant 0 : i32
    %c0_i32_1 = arith.constant 0 : i32
    return %c0_i32, %arg0, %arg1, %c0_i32_0 : i32, i32, i32, i32
  }
  func.func @transform_6(%arg0: i32, %arg1: i32) -> (i32, i32, i32, i32) {
    %c0_i32 = arith.constant 0 : i32
    %c0_i32_0 = arith.constant 0 : i32
    %c0_i32_1 = arith.constant 0 : i32
    return %arg0, %arg1, %c0_i32, %c0_i32_0 : i32, i32, i32, i32
  }
}

</mosaic_0001>

<bundles_post_ra>
// kernel: neg.0
= control target key start
LH: loop header
LB: loop body
LE: loop exit
PB: predicated region body
PF: predicated region fallthrough
CT: control target
= control target key end

     0   :  { %s148_s0 = inlined_call_operand.vmem [shape: bf16[2,2,16,128], index: 0, kind: input, shape index: {}]   ;;  %s149_s1 = inlined_call_operand.vmem [shape: bf16[2,2,16,128], index: 1, kind: output, shape index: {}]  }
   0x1   :  { %v2_v0 = vld [vmem:[%s148_s0] sm:$0xff]   ;;  %v88_v1 = vld [vmem:[%s148_s0 + $0x10] sm:$0xff]   ;;  %v90_v2 = vld [vmem:[%s148_s0 + $0x8] sm:$0xff]  }
   0x2   :  { %v3_v3 = vunpack.c.l.bf16 %v2_v0  ;;  %v13_v4 = vunpack.c.l.bf16 %v88_v1  ;;  %v24_v5 = vunpack.c.l.bf16 %v90_v2  ;;  %v92_v6 = vld [vmem:[%s148_s0 + $0x18] sm:$0xff]   ;;  %v46_v7 = vunpack.c.h.bf16 %v2_v0 }
   0x3   :  { %v35_v8 = vunpack.c.l.bf16 %v92_v6  ;;  %v57_v9 = vunpack.c.h.bf16 %v88_v1  ;;  %v68_v10 = vunpack.c.h.bf16 %v90_v2  ;;  %v79_v11 = vunpack.c.h.bf16 %v92_v6 }
   0x4   :  { %v7_v12 = vxor.u32 2147483648, %v3_v3  ;;  %v17_v13 = vxor.u32 2147483648, %v13_v4  ;;  %v28_v14 = vxor.u32 2147483648, %v24_v5  ;;  %v50_v15 = vxor.u32 2147483648, %v46_v7 }
   0x5   :  { %v39_v16 = vxor.u32 2147483648, %v35_v8  ;;  %v61_v17 = vxor.u32 2147483648, %v57_v9  ;;  %v72_v21 = vxor.u32 2147483648, %v68_v10  ;;  %v83_v23 = vxor.u32 2147483648, %v79_v11 }
   0x6   :  { %v9_v18 = vpack.c.bf16 0.0, %v7_v12  ;;  %v20_v19 = vpack.c.bf16 0.0, %v17_v13  ;;  %v31_v20 = vpack.c.bf16 0.0, %v28_v14  ;;  %v53_v24 = vpack.c.bf16 0.0, %v50_v15 }
   0x7   :  { %v42_v22 = vpack.c.bf16 0.0, %v39_v16  ;;  %v64_v25 = vpack.c.bf16 0.0, %v61_v17  ;;  %v75_v26 = vpack.c.bf16 0.0, %v72_v21  ;;  %v86_v27 = vpack.c.bf16 0.0, %v83_v23 }
   0x8   :  { %10 = vst [vmem:[%s149_s1] sm:$0xf] %v9_v18 }
   0x9   :  { %89 = vst [vmem:[%s149_s1 + $0x10] sm:$0xf] %v20_v19 }
   0xa   :  { %91 = vst [vmem:[%s149_s1 + $0x8] sm:$0xf] %v31_v20 }
   0xb   :  { %93 = vst [vmem:[%s149_s1 + $0x18] sm:$0xf] %v42_v22 }
   0xc   :  { %95 = vst [vmem:[%s149_s1 + $0x4] sm:$0xf] %v53_v24 }
   0xd   :  { %97 = vst [vmem:[%s149_s1 + $0x14] sm:$0xf] %v64_v25 }
   0xe   :  { %99 = vst [vmem:[%s149_s1 + $0xc] sm:$0xf] %v75_v26 }
   0xf   :  { %101 = vst [vmem:[%s149_s1 + $0x1c] sm:$0xf] %v86_v27 }

// kernel: wtd_loss.1
= control target key start
LH: loop header
LB: loop body
LE: loop exit
PB: predicated region body
PF: predicated region fallthrough
CT: control target
= control target key end

     0   :  { %s934_s21 = smov 0   ;;  %s936_s22 = smov 0   ;;  %s1041_s0 = inlined_call_operand.vmem [shape: f32[2,16,128], index: 0, kind: input, shape index: {}]   ;;  %s1042_s1 = inlined_call_operand.vmem [shape: f32[2,16,128], index: 1, kind: input, shape index: {}]   ;;  %s1043_s2 = inlined_call_operand.vmem [shape: f32[2,16,128], index: 2, kind: input, shape index: {}]   ;;  %s1044_s3 = inlined_call_operand.vmem [shape: f32[2,16,128], index: 3, kind: input, shape index: {}]   ;;  %s1045_s4 = inlined_call_operand.vmem [shape: f32[2,16,128], index: 4, kind: input, shape index: {}]   ;;  %s1046_s5 = inlined_call_operand.vmem [shape: bf16[2,2,16,128], index: 5, kind: output, shape index: {0}]   ;;  %s1047_s6 = inlined_call_operand.vmem [shape: f32[2,1,4,128], index: 6, kind: output, shape index: {1}]  }
   0x1   :  { %s938_s23 = smov 0   ;;  %s940_s24 = smov 0  }
   0x2   :  { %s942_s25 = smov 0  }
   0x3 LB: > { %s772_s26 = sadd.s32 4294967295, %s896_s25   ;;  %s29_s27 = sadd.s32 1, %s892_s24  ;;  %s896_s25 = sphi %s942_s25, %s17_s25   ;;  %s892_s24 = sphi %s940_s24, %s1052_s24   ;;  %s888_s23 = sphi %s938_s23, %s1051_s23   ;;  %s884_s22 = sphi %s936_s22, %s1050_s22   ;;  %s880_s21 = sphi %s934_s21, %s1049_s21  }
   0x4   : > { %p31_p0 = scmp.ge.s32.totalorder %s29_s27, 2  ;;  %s178_s28 = sadd.s32 1, %s884_s22 }
   0x5   : > { %p188_p1 = scmp.ne.s32.totalorder %s884_s22, %s880_s21  ;;  %p189_p2 = scmp.eq.s32.totalorder %s772_s26, 1 }
   0x6   : > { %s1054_s27 = smov (%p31_p0, %s29_s27), 0  ;;  %p776_p4 = scmp.ge.s32.totalorder %s896_s25, 1 }
   0x7   : > { %p966_p3 = por %p189_p2, %p188_p1  ;;  %s173_s30 = ssub.s32 %s892_s24, %s1054_s27 }
   0x8   : > { %p306_p5 = scmp.lt.s32.totalorder %s896_s25, 3  ;;  %p176_p6 = scmp.eq.s32.totalorder %s173_s30, 0 }
   0xa   : > { %p307_p7 = pnand %p776_p4, %p306_p5 }
   0xb   : > { %s975_s7 = scalar_select %p176_p6, %s884_s22, %s178_s28  }
   0xc   : > { %310 = sbr.rel (%p307_p7) target bundleno = 49 (0x31), region = 40  ;;  %p383_p8 = scmp.lt.s32.totalorder (!%p307_p7), %s888_s23, 1 }
   0xd   : > { %s370_s28 = sand.u32 (!%p307_p7), 1, %s880_s21  }
   0xe   : > { %s777_s21 = sshll.u32 (!%p307_p7), %s370_s28, 4 }
  0x11   : > { %s979_s8 = scalar_select %p383_p8, %s888_s23, 1  ;;  %v898_v7 = vmov 0.0   ;;  %vm519_vm4 = vcmask 1040384   ;;  %vm521_vm5 = vcmask 1041408   ;;  %vm523_vm6 = vcmask 1042432  }
  0x13   : > { %s800_s9 = sshll.u32 %s979_s8, 4 }
  0x14   : > { %s390_s12 = scalar_lea.vmem %s1041_s0, %s800_s9  ;;  %s410_s15 = scalar_lea.vmem %s1043_s2, %s800_s9 }
  0x15   : > { %s430_s18 = scalar_lea.vmem %s1045_s4, %s800_s9  ;;  %v440_v0 = vld [vmem:[%s390_s12] sm:$0xff]  ;;  %v441_v1 = vld [vmem:[%s390_s12 + $0x8] sm:$0xff]  ;;  %s400_s26 = scalar_lea.vmem %s1042_s1, %s800_s9 }
  0x16   : > { %v444_v2 = vld [vmem:[%s410_s15] sm:$0xff]  ;;  %v445_v3 = vld [vmem:[%s410_s15 + $0x8] sm:$0xff]  ;;  %vm462_vm0 = vcmp.ge.f32.partialorder %v440_v0, 0.1  ;;  %s420_s11 = scalar_lea.vmem %s1044_s3, %s800_s9  ;;  %vm463_vm1 = vcmp.ge.f32.partialorder %v441_v1, 0.1 }
  0x17   : > { %v448_v4 = vld [vmem:[%s430_s18] sm:$0xff]  ;;  %v450_v5 = vsub.f32 %v444_v2, %v440_v0  ;;  %v451_v6 = vsub.f32 %v445_v3, %v441_v1  ;;  %v791_v8 = vsel %vm462_vm0, 1.0, %v898_v7  ;;  %v443_v10 = vld [vmem:[%s400_s26 + $0x8] sm:$0xff]  ;;  %v792_v14 = vsel %vm463_vm1, 1.0, %v898_v7  ;;  %s1010_s9 = scalar_lea.vmem [#allocation2], %s777_s21  ;;  %s788_s12 = sshll.u32 %s979_s8, 2 }
  0x18   : > { %v442_v9 = vld [vmem:[%s400_s26] sm:$0xff]  ;;  %v449_v12 = vld [vmem:[%s430_s18 + $0x8] sm:$0xff]  ;;  %v483_v18 = vadd.f32 %v792_v14, %v791_v8  ;;  %vm465_vm3 = vcmp.ge.f32.partialorder %v443_v10, 0.1  ;;  %s439_s15 = scalar_lea.vmem %s1047_s6, %s788_s12  ;;  %s805_s8 = sshll.u32 (%p966_p3), %s888_s23, 3 }
  0x19   : > { %v446_v11 = vld [vmem:[%s420_s11] sm:$0xff]  ;;  %v454_v13 = vmul.f32 %v450_v5, %v450_v5  ;;  %v447_v15 = vld [vmem:[%s420_s11 + $0x8] sm:$0xff]  ;;  %vm464_vm2 = vcmp.ge.f32.partialorder %v442_v9, 0.1  ;;  %v455_v17 = vmul.f32 %v451_v6, %v451_v6  ;;  %v794_v23 = vsel %vm465_vm3, 1.0, %v898_v7  ;;  %s544_s18 = scalar_lea.vmem (%p966_p3), %s1046_s5, %s805_s8 }
  0x1a   : > { %v452_v16 = vsub.f32 %v446_v11, %v442_v9  ;;  %v453_v19 = vsub.f32 %v447_v15, %v443_v10  ;;  %v793_v22 = vsel %vm464_vm2, 1.0, %v898_v7  ;;  %v484_v25 = vrot.slane %v483_v18, 4 }
  0x1b   : > { %v456_v20 = vmul.f32 %v454_v13, %v448_v4  ;;  %v457_v24 = vmul.f32 %v455_v17, %v449_v12  ;;  %v503_v27 = vadd.f32 %v794_v23, %v793_v22 }
  0x1c   : > { %v458_v21 = vmul.f32 %v452_v16, %v452_v16  ;;  %v459_v26 = vmul.f32 %v453_v19, %v453_v19  ;;  %v485_v32 = vadd.f32 %v484_v25, %v483_v18 }
  0x1d   : > { %v466_v28 = vsel %vm462_vm0, -1e+30, %v456_v20  ;;  %v490_v29 = vsel %vm462_vm0, %v456_v20, 0.0  ;;  %v467_v31 = vsel %vm463_vm1, -1e+30, %v457_v24  ;;  %v491_v33 = vsel %vm463_vm1, %v457_v24, 0.0 }
  0x1e   : > { %v460_v30 = vmul.f32 %v458_v21, %v448_v4  ;;  %v461_v34 = vmul.f32 %v459_v26, %v449_v12  ;;  %v809_v35 = vpack.c.bf16 %v467_v31, %v466_v28  ;;  %v492_v36 = vadd.f32 %v491_v33, %v490_v29 }
  0x1f   : > { %v504_v38 = vrot.slane %v503_v27, 4  ;;  %v486_v39 = vrot.slane %v485_v32, 2 }
  0x20   : > { %v472_v37 = vsel %vm464_vm2, -1e+30, %v460_v30  ;;  %v473_v40 = vsel %vm465_vm3, -1e+30, %v461_v34  ;;  %v510_v41 = vsel %vm464_vm2, %v460_v30, 0.0  ;;  %v511_v42 = vsel %vm465_vm3, %v461_v34, 0.0  ;;  %810 = vst [vmem:[%s1010_s9] sm:$0xff] %v809_v35  }
  0x21   : > { %v493_v43 = vrot.slane %v492_v36, 4  ;;  %v814_v44 = vpack.c.bf16 %v473_v40, %v472_v37  ;;  %v505_v45 = vadd.f32 %v504_v38, %v503_v27  ;;  %v512_v46 = vadd.f32 %v511_v42, %v510_v41 }
  0x22   : > { %v487_v47 = vadd.f32 %v486_v39, %v485_v32 }
  0x23   : > { %v494_v48 = vadd.f32 %v493_v43, %v492_v36  ;;  %816 = vst [vmem:[%s1010_s9 + $0x8] sm:$0xff] %v814_v44   ;;  %v513_v49 = vrot.slane %v512_v46, 4  ;;  %v506_v50 = vrot.slane %v505_v45, 2 }
  0x24   : > { %v488_v52 = vrot.slane %v487_v47, 1 }
  0x25   : > { %v495_v51 = vrot.slane %v494_v48, 2  ;;  %v507_v53 = vadd.f32 %v506_v50, %v505_v45  ;;  %v514_v54 = vadd.f32 %v513_v49, %v512_v46 }
  0x26   : > { %v489_v58 = vadd.f32 %v488_v52, %v487_v47 }
  0x27   : > { %v496_v55 = vadd.f32 %v495_v51, %v494_v48  ;;  %v508_v56 = vrot.slane %v507_v53, 1  ;;  %v515_v57 = vrot.slane %v514_v54, 2  ;;  %v561_v4 = vld [vmem:[%s1010_s9] sm:$0xff] (%p966_p3)  }
  0x28   : > { %562 = vst [vmem:[%s544_s18] sm:$0xff] (%p966_p3), %v561_v4  }
  0x29   : > { %v497_v59 = vrot.slane %v496_v55, 1  ;;  %v516_v60 = vadd.f32 %v515_v57, %v514_v54  ;;  %v509_v61 = vadd.f32 %v508_v56, %v507_v53 }
  0x2a   : > { %v565_v5 = vld [vmem:[%s1010_s9 + $0x8] sm:$0xff] (%p966_p3)  }
  0x2b   : > { %v498_v62 = vadd.f32 %v497_v59, %v496_v55  ;;  %v517_v63 = vrot.slane %v516_v60, 1  ;;  %566 = vst [vmem:[%s544_s18 + $0x10] sm:$0xff] (%p966_p3), %v565_v5  }
  0x2c   : > { %539 = sbr.rel (!%p966_p3) target bundleno = 49 (0x31), region = 44 }
  0x2d   : > { %v518_v0 = vadd.f32 %v517_v63, %v516_v60  ;;  %v520_v1 = vsel %vm519_vm4, %v489_v58, %v498_v62 }
  0x2e   : > { %v522_v2 = vsel %vm521_vm5, %v520_v1, %v509_v61 }
  0x2f   : > { %v524_v3 = vsel %vm523_vm6, %v522_v2, %v518_v0 }
  0x30   : > { %525 = vst [vmem:[%s439_s15] sm:$0xf] %v524_v3 }
  0x31 PF: > { %s17_s25 = sadd.s32 1, %s896_s25   ;;  %s1049_s21 = smov %s884_s22 }
  0x32   : > { %p14_p9 = scmp.ge.s32.totalorder %s17_s25, 4   ;;  %s1050_s22 = smov %s975_s7 }
  0x33   : > { %s1051_s23 = smov %s892_s24  ;;  %s1052_s24 = smov %s1054_s27 }
  0x34   :  { %16 = sbr.rel (!%p14_p9) target bundleno = 3 (0x3), region = 136 }

</bundles_post_ra>
